<compile_context>
chip_gen: v7x
topology: tpu7x:2x2x1
jax: 0.10.0
libtpu: 0.0.40
codegen_flags: <defaults>
</compile_context>

<pallas_src>
import jax
import jax.numpy as jnp
from jax.experimental import pallas as pl
from jax.experimental.pallas import tpu as pltpu


# ---------------------------------------------------------------------------
# DMA-only identity copy: HBM -> HBM, chunked into a few overlapping DMAs.
# ---------------------------------------------------------------------------
def _make_dma_copy_kernel(chunk_bounds):
    """Build a kernel copying x_ref -> o_ref with one async DMA per chunk.

    chunk_bounds: static tuple of (start, size) pairs along dim 0.
    """

    def kernel(x_ref, o_ref, sems):
        copies = []
        for i, (start, size) in enumerate(chunk_bounds):
            cp = pltpu.make_async_copy(
                x_ref.at[pl.ds(start, size)],
                o_ref.at[pl.ds(start, size)],
                sems.at[i],
            )
            cp.start()
            copies.append(cp)
        # All DMAs are in flight; now block on each.
        for cp in copies:
            cp.wait()

    return kernel


_CHUNK_BYTES_THRESHOLD = 2 * 1024 * 1024   # only bother splitting copies >= 2 MiB
_MAX_CHUNKS = 4                            # a handful of large DMAs is enough overlap


def pallas_contiguous_copy(x: jax.Array) -> jax.Array:
    """Materialize a fresh buffer with the same contents/shape as `x`.

    Pure HBM->HBM DMA: no VMEM is used and no TensorCore vld/vst path is
    involved, so it runs at the HBM roofline on v5e / v6e / v7x.
    """
    if x.size == 0:
        return x
    if x.ndim == 0:
        return pallas_contiguous_copy(x.reshape(1)).reshape(())

    nbytes = x.size * x.dtype.itemsize
    dim0 = x.shape[0]
    if nbytes >= _CHUNK_BYTES_THRESHOLD and dim0 >= 2:
        n_chunks = min(dim0, _MAX_CHUNKS)
    else:
        n_chunks = 1

    # Static chunk boundaries along dim 0 (sizes differ by at most one row).
    base, rem = divmod(dim0, n_chunks)
    bounds = []
    start = 0
    for i in range(n_chunks):
        size = base + (1 if i < rem else 0)
        bounds.append((start, size))
        start += size

    return pl.pallas_call(
        _make_dma_copy_kernel(tuple(bounds)),
        out_shape=jax.ShapeDtypeStruct(x.shape, x.dtype),
        in_specs=[pl.BlockSpec(memory_space=pl.ANY)],
        out_specs=pl.BlockSpec(memory_space=pl.ANY),
        scratch_shapes=[pltpu.SemaphoreType.DMA((n_chunks,))],
    )(x)


# ---------------------------------------------------------------------------
# View semantics (torch .view with optional .contiguous()).
# ---------------------------------------------------------------------------
def _resolve_shape(shape, total):
    shape = list(shape)
    if -1 in shape:
        idx = shape.index(-1)
        known = 1
        for j, s in enumerate(shape):
            if j != idx:
                known *= s
        assert known != 0 and total % known == 0, "cannot infer -1 dimension"
        shape[idx] = total // known
    prod = 1
    for s in shape:
        prod *= s
    assert prod == total, "view shape incompatible with number of elements"
    return tuple(shape)


def view_forward(x: jax.Array, shape: tuple, contiguous: bool = False,
                 force_copy: bool = False) -> jax.Array:
    """Equivalent of View(shape, contiguous).forward(x).

    Every JAX array is logically contiguous, so torch's .contiguous() is a
    no-op here and the default path is a metadata-only reshape (zero HBM
    traffic).  Pass force_copy=True together with contiguous=True to actually
    materialize a fresh buffer via the DMA-only Pallas kernel (what torch
    would pay on a genuinely non-contiguous tensor).

    # TODO(synk): torch .view() errors on non-contiguous tensors; JAX arrays
    # carry no stride metadata, so that error condition cannot be reproduced.
    """
    target = _resolve_shape(shape, x.size)
    if contiguous and force_copy:
        x = pallas_contiguous_copy(x)
    return jnp.reshape(x, target)


if __name__ == "__main__":
    key = jax.random.PRNGKey(0)

    # Input consistent with a small NCHW activation: (batch=2, C=4, H=16, W=16)
    x = jax.random.normal(key, (2, 4, 16, 16), dtype=jnp.float32)

    # --- contiguous=True + forced copy: exercises the DMA-only kernel -------
    target_shape = (2, 4, 16 * 16)
    y = view_forward(x, target_shape, contiguous=True, force_copy=True)
    jax.block_until_ready(y)
    assert y.shape == target_shape and y.dtype == x.dtype
    assert bool(jnp.array_equal(y, x.reshape(target_shape)))

    # --- default contiguous=True path: pure metadata reshape ----------------
    y1 = view_forward(x, target_shape, contiguous=True)
    jax.block_until_ready(y1)
    assert bool(jnp.array_equal(y1, x.reshape(target_shape)))

    # --- contiguous=False path: metadata-only reshape with -1 inference -----
    y2 = view_forward(x, (-1, 256))
    jax.block_until_ready(y2)
    assert y2.shape == (8, 256)
    assert bool(jnp.array_equal(y2, x.reshape(8, 256)))

    # --- bf16 forced copy ----------------------------------------------------
    xb = x.astype(jnp.bfloat16)
    y3 = view_forward(xb, (2, -1), contiguous=True, force_copy=True)
    jax.block_until_ready(y3)
    assert y3.shape == (2, 1024) and y3.dtype == jnp.bfloat16
    assert bool(jnp.array_equal(y3, xb.reshape(2, 1024)))

    # --- moderately sized input: exercises the multi-DMA (chunked) path -----
    xl = jax.random.normal(jax.random.PRNGKey(1), (8, 64, 1024), dtype=jnp.float32)
    yl = view_forward(xl, (8, -1), contiguous=True, force_copy=True)
    jax.block_until_ready(yl)
    assert yl.shape == (8, 64 * 1024)
    assert bool(jnp.array_equal(yl, xl.reshape(8, 64 * 1024)))

    print("KERNEL_OK")
</pallas_src>

<mosaic_0001>
module attributes {stable_mosaic.version = 11 : i64} {
  func.func @kernel(%arg0: memref<2x4x16x16xf32, #tpu.memory_space<any>>, %arg1: memref<2x4x16x16xf32, #tpu.memory_space<any>>, %arg2: memref<1x!tpu.dma_semaphore, #tpu.memory_space<semaphore_mem>>) attributes {dimension_semantics = [], scalar_prefetch = 0 : i64, scratch_operands = 1 : i64, tpu.core_type = #tpu.core_type<tc>} {
    %c0_i32 = arith.constant 0 : i32
    %c0_i32_0 = arith.constant 0 : i32
    %c0_i32_1 = arith.constant 0 : i32
    %c0_i32_2 = arith.constant 0 : i32
    %c0_i32_3 = arith.constant 0 : i32
    %0 = tpu.memref_slice %arg0[%c0_i32_0, %c0_i32_1, %c0_i32_2, %c0_i32_3] : memref<2x4x16x16xf32, #tpu.memory_space<any>> -> memref<2x4x16x16xf32, #tpu.memory_space<any>>
    %c0_i32_4 = arith.constant 0 : i32
    %c0_i32_5 = arith.constant 0 : i32
    %c0_i32_6 = arith.constant 0 : i32
    %c0_i32_7 = arith.constant 0 : i32
    %1 = tpu.memref_slice %arg1[%c0_i32_4, %c0_i32_5, %c0_i32_6, %c0_i32_7] : memref<2x4x16x16xf32, #tpu.memory_space<any>> -> memref<2x4x16x16xf32, #tpu.memory_space<any>>
    %2 = tpu.memref_slice %arg2[%c0_i32] : memref<1x!tpu.dma_semaphore, #tpu.memory_space<semaphore_mem>> -> memref<1x!tpu.dma_semaphore, #tpu.memory_space<semaphore_mem>>
    %3 = tpu.memref_squeeze %2 : memref<1x!tpu.dma_semaphore, #tpu.memory_space<semaphore_mem>> -> memref<!tpu.dma_semaphore, #tpu.memory_space<semaphore_mem>>
    tpu.enqueue_dma source(%0 : memref<2x4x16x16xf32, #tpu.memory_space<any>>) target(%1 : memref<2x4x16x16xf32, #tpu.memory_space<any>>) target_semaphore(%3 : memref<!tpu.dma_semaphore, #tpu.memory_space<semaphore_mem>>)
    %c0_i32_8 = arith.constant 0 : i32
    %c0_i32_9 = arith.constant 0 : i32
    %c0_i32_10 = arith.constant 0 : i32
    %c0_i32_11 = arith.constant 0 : i32
    %c0_i32_12 = arith.constant 0 : i32
    %4 = tpu.memref_slice %arg0[%c0_i32_9, %c0_i32_10, %c0_i32_11, %c0_i32_12] : memref<2x4x16x16xf32, #tpu.memory_space<any>> -> memref<2x4x16x16xf32, #tpu.memory_space<any>>
    %c0_i32_13 = arith.constant 0 : i32
    %c0_i32_14 = arith.constant 0 : i32
    %c0_i32_15 = arith.constant 0 : i32
    %c0_i32_16 = arith.constant 0 : i32
    %5 = tpu.memref_slice %arg1[%c0_i32_13, %c0_i32_14, %c0_i32_15, %c0_i32_16] : memref<2x4x16x16xf32, #tpu.memory_space<any>> -> memref<2x4x16x16xf32, #tpu.memory_space<any>>
    %6 = tpu.memref_slice %arg2[%c0_i32_8] : memref<1x!tpu.dma_semaphore, #tpu.memory_space<semaphore_mem>> -> memref<1x!tpu.dma_semaphore, #tpu.memory_space<semaphore_mem>>
    %7 = tpu.memref_squeeze %6 : memref<1x!tpu.dma_semaphore, #tpu.memory_space<semaphore_mem>> -> memref<!tpu.dma_semaphore, #tpu.memory_space<semaphore_mem>>
    tpu.wait_dma2 semaphore(%7 : memref<!tpu.dma_semaphore, #tpu.memory_space<semaphore_mem>>) src(%4 : memref<2x4x16x16xf32, #tpu.memory_space<any>>) dst(%5 : memref<2x4x16x16xf32, #tpu.memory_space<any>>)
    return
  }
}

</mosaic_0001>

<bundles_post_ra>
// kernel: tpu_custom_call.1
= control target key start
LH: loop header
LB: loop body
LE: loop exit
PB: predicated region body
PF: predicated region fallthrough
CT: control target
= control target key end

     0   :  { %s36_s6 = smov [#allocation2]   ;;  %s37_s7 = smov [#allocation3]   ;;  %s55_s0 = inlined_call_operand.hbm [shape: f32[2,4,16,16], index: 0, kind: input, shape index: {}]   ;;  %s56_s1 = inlined_call_operand.hbm [shape: f32[2,4,16,16], index: 1, kind: output, shape index: {}]  }
   0x1   :  { %s38_s8 = smov 0  }
   0x2   :  { %18 = dma.general %s55_s0, 2048, %s56_s1, %s36_s6, %s37_s7, [#allocation4], %s38_s8, 0  }
   0x3   :  { %34 = dma.done.wait [#allocation2], 2048 }
   0x4   :  { %35 = vsyncadd [#allocation2], 4294965248 }
   0x5   :  { %24 = vsyncmov [#allocation2] }
   0x8   :  { %s25_s13 = vpop.sfrf %24 }
   0x9   :  { %p30_p0 = scmp.ne.s32.totalorder %s25_s13, 0 }
   0xb   :  { %29 = shalt.err (%p30_p0)  }

</bundles_post_ra>
